<compile_context>
chip_gen: v7x
topology: tpu7x:2x2x1
jax: 0.10.0
libtpu: 0.0.40
codegen_flags: <defaults>
</compile_context>

<pallas_src>
import functools

import jax
import jax.numpy as jnp
from jax.experimental import pallas as pl
from jax.experimental.pallas import tpu as pltpu


def _round_up(n, m):
    return ((n + m - 1) // m) * m


def _lstm_fc_kernel(x_ref, wih_ref, wfc_ref, bfc_ref, out_ref):
    # x_ref   : (Bp, Dp)       batch on sublanes, padded features (+ ones column) on lanes
    # wih_ref : (Dp, 3*GP)     gate blocks [i | g | o], each 128-lane aligned, bias row folded in
    # wfc_ref : (GP, OP)       FC weights, zero-padded to lane-dense shapes
    # bfc_ref : (1, OP)        FC bias (lane-padded)
    # out_ref : (Bp, OP)       lane-dense output (unmasked store)
    GP = wih_ref.shape[1] // 3

    # One MXU pass computes all live gates; biases arrive via the folded ones column.
    gates = jnp.dot(x_ref[...], wih_ref[...],
                    preferred_element_type=jnp.float32)          # (Bp, 3*GP)

    # 128-lane-aligned slices -> whole-vreg selections, no lane shifts.
    i_gate = jax.nn.sigmoid(gates[:, 0 * GP:1 * GP])
    g_gate = jnp.tanh(gates[:, 1 * GP:2 * GP])
    o_gate = jax.nn.sigmoid(gates[:, 2 * GP:3 * GP])

    # c1 = i*g (f*c0 == 0); padded lanes give 0.5*tanh(0) == 0, so h pad lanes are exactly 0.
    h = o_gate * jnp.tanh(i_gate * g_gate)                       # (Bp, GP)

    out_ref[...] = jnp.dot(h, wfc_ref[...],
                           preferred_element_type=jnp.float32) + bfc_ref[...]


def prepare_lstm_params(w_ih, b_ih, b_hh, w_fc, b_fc, *, hidden_size, input_size, output_size):
    """One-time packing of the PyTorch parameters into lane-dense, bias-folded kernel operands.

    NOTE: W_hh is intentionally absent — it multiplies h0 == 0 and never affects the output.
    """
    H, D, O = hidden_size, input_size, output_size
    GP = _round_up(H, 128)          # per-gate lane block (128 for H <= 128)
    Dp = _round_up(D + 1, 128)      # contraction dim incl. the folded-bias ("ones") row
    OP = _round_up(O, 128)          # lane-dense output width

    b_gate = (b_ih + b_hh).astype(jnp.float32)

    # Only the live gates (i, g, o). The forget gate is dead (f * c0 == 0) and never packed.
    wih_packed = jnp.zeros((Dp, 3 * GP), jnp.float32)
    for blk, g0 in enumerate((0, 2 * H, 3 * H)):                 # i, g, o rows of W_ih
        wih_packed = wih_packed.at[:D, blk * GP: blk * GP + H].set(
            jnp.transpose(w_ih[g0:g0 + H, :]).astype(jnp.float32))
        wih_packed = wih_packed.at[D, blk * GP: blk * GP + H].set(b_gate[g0:g0 + H])

    wfc_packed = jnp.zeros((GP, OP), jnp.float32)
    wfc_packed = wfc_packed.at[:H, :O].set(jnp.transpose(w_fc).astype(jnp.float32))

    bfc_packed = jnp.zeros((1, OP), jnp.float32)
    bfc_packed = bfc_packed.at[0, :O].set(b_fc.astype(jnp.float32))

    return wih_packed, wfc_packed, bfc_packed


def lstm_model_forward(x, wih_packed, wfc_packed, bfc_packed, *, output_size):
    """x: (B, *features) -- flattened to (B, input_size) exactly like x.view(len(x), 1, -1)."""
    B = x.shape[0]
    x2d = x.reshape(B, -1).astype(jnp.float32)                   # (B, D)
    D = x2d.shape[1]
    Dp = wih_packed.shape[0]
    OP = wfc_packed.shape[1]
    Bp = _round_up(B, 8)                                         # sublane-dense batch

    # Pad features to Dp lanes and append the ones column that folds (b_ih + b_hh) into the matmul.
    x_aug = jnp.zeros((Bp, Dp), jnp.float32)
    x_aug = x_aug.at[:B, :D].set(x2d)
    x_aug = x_aug.at[:B, D].set(1.0)

    out_pad = pl.pallas_call(
        _lstm_fc_kernel,
        out_shape=jax.ShapeDtypeStruct((Bp, OP), jnp.float32),
        # No grid: single invocation, whole arrays resident in VMEM, no pipeline machinery.
        in_specs=[pl.BlockSpec(memory_space=pltpu.MemorySpace.VMEM)] * 4,
        out_specs=pl.BlockSpec(memory_space=pltpu.MemorySpace.VMEM),
    )(x_aug, wih_packed, wfc_packed, bfc_packed)

    return out_pad[:B, :output_size]


def reference_forward(x, w_ih, b_ih, b_hh, w_fc, b_fc, hidden_size):
    """Pure-JAX reference matching PyTorch nn.LSTM (seq=1, zero state) + nn.Linear."""
    B = x.shape[0]
    x2d = x.reshape(B, -1).astype(jnp.float32)
    gates = x2d @ w_ih.T + b_ih + b_hh
    H = hidden_size
    i = jax.nn.sigmoid(gates[:, 0 * H:1 * H])
    f = jax.nn.sigmoid(gates[:, 1 * H:2 * H])
    g = jnp.tanh(gates[:, 2 * H:3 * H])
    o = jax.nn.sigmoid(gates[:, 3 * H:4 * H])
    c = f * jnp.zeros_like(g) + i * g
    h = o * jnp.tanh(c)
    return h @ w_fc.T + b_fc


if __name__ == "__main__":
    # Small shapes consistent with the module's forward.
    B = 2               # batch
    INPUT_SIZE = 64     # flattened feature size (e.g. an (8, 8) input per sample)
    HIDDEN = 32
    OUTPUT = 8

    key = jax.random.PRNGKey(0)
    kx, k1, k2, k3, k4, k5 = jax.random.split(key, 6)

    # Deterministic "torch-like" init: uniform(-1/sqrt(H), 1/sqrt(H)) for LSTM/Linear params.
    bound = 1.0 / (HIDDEN ** 0.5)
    x = jax.random.normal(kx, (B, 8, 8), dtype=jnp.float32)          # flattened -> (B, 64)
    w_ih = jax.random.uniform(k1, (4 * HIDDEN, INPUT_SIZE), jnp.float32, -bound, bound)
    b_ih = jax.random.uniform(k2, (4 * HIDDEN,), jnp.float32, -bound, bound)
    b_hh = jax.random.uniform(k3, (4 * HIDDEN,), jnp.float32, -bound, bound)
    # NOTE: W_hh exists in nn.LSTM but multiplies h0 == 0 here, so it never affects the output.
    w_fc = jax.random.uniform(k4, (OUTPUT, HIDDEN), jnp.float32, -bound, bound)
    b_fc = jax.random.uniform(k5, (OUTPUT,), jnp.float32, -bound, bound)

    # Weight packing happens once, outside the per-inference path.
    wih_p, wfc_p, bfc_p = prepare_lstm_params(
        w_ih, b_ih, b_hh, w_fc, b_fc,
        hidden_size=HIDDEN, input_size=INPUT_SIZE, output_size=OUTPUT)

    fwd = jax.jit(functools.partial(lstm_model_forward, output_size=OUTPUT))
    out = fwd(x, wih_p, wfc_p, bfc_p)
    out = jax.block_until_ready(out)

    ref = reference_forward(x, w_ih, b_ih, b_hh, w_fc, b_fc, HIDDEN)
    assert out.shape == (B, OUTPUT)
    assert jnp.allclose(out, ref, atol=1e-5, rtol=1e-5), (out, ref)

    print("KERNEL_OK")
</pallas_src>

<mosaic_0001>
module attributes {stable_mosaic.version = 11 : i64} {
  func.func @_lstm_fc_kernel(%arg0: memref<8x128xf32, #tpu.memory_space<vmem>>, %arg1: memref<128x384xf32, #tpu.memory_space<vmem>>, %arg2: memref<128x128xf32, #tpu.memory_space<vmem>>, %arg3: memref<1x128xf32, #tpu.memory_space<vmem>>, %arg4: memref<8x128xf32, #tpu.memory_space<vmem>>) attributes {dimension_semantics = [], scalar_prefetch = 0 : i64, scratch_operands = 0 : i64, tpu.core_type = #tpu.core_type<tc>} {
    %c0 = arith.constant 0 : index
    %c0_0 = arith.constant 0 : index
    %0 = vector.load %arg0[%c0, %c0_0] : memref<8x128xf32, #tpu.memory_space<vmem>>, vector<8x128xf32>
    %c0_1 = arith.constant 0 : index
    %c0_2 = arith.constant 0 : index
    %1 = vector.load %arg1[%c0_1, %c0_2] : memref<128x384xf32, #tpu.memory_space<vmem>>, vector<128x384xf32>
    %cst = arith.constant dense<0.000000e+00> : vector<8x384xf32>
    %2 = tpu.matmul %0, %1, %cst {dimension_numbers = #tpu.dot_dimension_numbers<[1], [0], [0], [1], [0, 0, 1, 1], [], []>} : vector<8x128xf32>, vector<128x384xf32>, vector<8x384xf32> -> vector<8x384xf32>
    %3 = vector.extract_strided_slice %2 {offsets = [0, 0], sizes = [8, 128], strides = [1, 1]} : vector<8x384xf32> to vector<8x128xf32>
    %4 = arith.negf %3 : vector<8x128xf32>
    %5 = math.exp %4 : vector<8x128xf32>
    %cst_3 = arith.constant 1.000000e+00 : f32
    %6 = vector.broadcast %cst_3 : f32 to vector<8x128xf32>
    %7 = arith.addf %6, %5 : vector<8x128xf32>
    %8 = arith.divf %6, %7 : vector<8x128xf32>
    %9 = vector.extract_strided_slice %2 {offsets = [0, 128], sizes = [8, 128], strides = [1, 1]} : vector<8x384xf32> to vector<8x128xf32>
    %10 = math.tanh %9 : vector<8x128xf32>
    %11 = vector.extract_strided_slice %2 {offsets = [0, 256], sizes = [8, 128], strides = [1, 1]} : vector<8x384xf32> to vector<8x128xf32>
    %12 = arith.negf %11 : vector<8x128xf32>
    %13 = math.exp %12 : vector<8x128xf32>
    %cst_4 = arith.constant 1.000000e+00 : f32
    %14 = vector.broadcast %cst_4 : f32 to vector<8x128xf32>
    %15 = arith.addf %14, %13 : vector<8x128xf32>
    %16 = arith.divf %14, %15 : vector<8x128xf32>
    %17 = arith.mulf %8, %10 : vector<8x128xf32>
    %18 = math.tanh %17 : vector<8x128xf32>
    %19 = arith.mulf %16, %18 : vector<8x128xf32>
    %c0_5 = arith.constant 0 : index
    %c0_6 = arith.constant 0 : index
    %20 = vector.load %arg2[%c0_5, %c0_6] : memref<128x128xf32, #tpu.memory_space<vmem>>, vector<128x128xf32>
    %cst_7 = arith.constant dense<0.000000e+00> : vector<8x128xf32>
    %21 = tpu.matmul %19, %20, %cst_7 {dimension_numbers = #tpu.dot_dimension_numbers<[1], [0], [0], [1], [0, 0, 1, 1], [], []>} : vector<8x128xf32>, vector<128x128xf32>, vector<8x128xf32> -> vector<8x128xf32>
    %c0_8 = arith.constant 0 : index
    %c0_9 = arith.constant 0 : index
    %22 = vector.load %arg3[%c0_8, %c0_9] : memref<1x128xf32, #tpu.memory_space<vmem>>, vector<1x128xf32>
    %23 = vector.broadcast %22 : vector<1x128xf32> to vector<8x128xf32>
    %24 = arith.addf %21, %23 : vector<8x128xf32>
    %c0_10 = arith.constant 0 : index
    %c0_11 = arith.constant 0 : index
    %25 = vector.load %arg4[%c0_10, %c0_11] : memref<8x128xf32, #tpu.memory_space<vmem>>, vector<8x128xf32>
    tpu.vector_store %arg4[%c0_10, %c0_11], %24 {strides = array<i32>} : memref<8x128xf32, #tpu.memory_space<vmem>>, vector<8x128xf32>,
    return
  }
}

</mosaic_0001>

<bundles_post_ra>
// kernel: lstm_model_forward.1
= control target key start
LH: loop header
LB: loop body
LE: loop exit
PB: predicated region body
PF: predicated region fallthrough
CT: control target
= control target key end

     0   :  { %9 = vsyncpa [#allocation3], 0  ;;  %s695_s0 = inlined_call_operand.vmem [shape: f32[8,128], index: 0, kind: input, shape index: {}]   ;;  %s696_s1 = inlined_call_operand.hbm [shape: f32[128,384], index: 1, kind: input, shape index: {}]   ;;  %s697_s2 = inlined_call_operand.hbm [shape: f32[128,128], index: 2, kind: input, shape index: {}]   ;;  %s698_s3 = inlined_call_operand.vmem [shape: f32[1,128], index: 3, kind: input, shape index: {}]   ;;  %s699_s4 = inlined_call_operand.vmem [shape: f32[8,128], index: 4, kind: output, shape index: {}]  }
   0x1   :  { %10 = vsyncpa [#allocation5], 0  ;;  %s607_s15 = smov [#allocation2]   ;;  %s559_s19 = scalar_lea.hbm %s696_s1, 6144 }
   0x2   :  { %s18_s16 = sshll.u32 %s607_s15, 4  ;;  %p560_p0 = scmp.ne.s32.totalorder %s696_s1, %s559_s19  ;;  %s19_s16 = int_to_ptr.vmem [resolvable:$true] %s18_s16 }
   0x3   :  { %p563_p1 = scmp.lt.u32.totalorder %s559_s19, %s696_s1 }
   0x5   :  { %p565_p2 = pnand %p563_p1, %p560_p0 }
   0x7   :  { %568 = shalt.err (!%p565_p2)
}
   0x8   :  { %s569_s24 = scalar_lea.vmem %s19_s16, 6144  ;;  %p574_p4 = scmp.lt.s32.totalorder %s19_s16, %s19_s16 }
   0x9   :  { %p570_p3 = scmp.ne.s32.totalorder %s19_s16, %s569_s24  ;;  %p575_p5 = scmp.lt.s32.totalorder %s569_s24, %s569_s24 }
   0xb   :  { %p576_p6 = por %p575_p5, %p574_p4 }
   0xd   :  { %p577_p7 = pnand %p576_p6, %p570_p3 }
   0xf   :  { %580 = shalt.err (!%p577_p7)
}
  0x10   :  { %s608_s25 = smov 384   ;;  %s609_s26 = smov 24  }
  0x11   :  { %24 = dma.hbm_to_vmem [thread:$0]  %s696_s1, 6144, %s19_s16, [#allocation3], %s608_s25, %s608_s25, %s609_s26  }
  0x12   :  { %s610_s29 = smov [#allocation4]   ;;  %s581_s7 = scalar_lea.hbm %s697_s2, 2048 }
  0x13   :  { %s30_s30 = sshll.u32 %s610_s29, 4  ;;  %p582_p8 = scmp.ne.s32.totalorder %s697_s2, %s581_s7  ;;  %s31_s30 = int_to_ptr.vmem [resolvable:$true] %s30_s30 }
  0x14   :  { %p585_p9 = scmp.lt.u32.totalorder %s581_s7, %s697_s2 }
  0x16   :  { %p587_p10 = pnand %p585_p9, %p582_p8 }
  0x18   :  { %590 = shalt.err (!%p587_p10)
}
  0x19   :  { %s591_s12 = scalar_lea.vmem %s31_s30, 2048  ;;  %p596_p12 = scmp.lt.s32.totalorder %s31_s30, %s31_s30 }
  0x1a   :  { %p592_p11 = scmp.ne.s32.totalorder %s31_s30, %s591_s12  ;;  %p597_p13 = scmp.lt.s32.totalorder %s591_s12, %s591_s12 }
  0x1c   :  { %p598_p0 = por %p597_p13, %p596_p12 }
  0x1e   :  { %p599_p1 = pnand %p598_p0, %p592_p11 }
  0x20   :  { %602 = shalt.err (!%p599_p1)
}
  0x21   :  { %s611_s1 = smov 128   ;;  %s612_s13 = smov 8  }
  0x22   :  { %36 = dma.hbm_to_vmem [thread:$0]  %s697_s2, 2048, %s31_s30, [#allocation5], %s611_s1, %s611_s1, %s612_s13  }
  0x23   :  { %603 = dma.done.wait [#allocation3], 6144  }
  0x24   :  { %604 = vsyncadd [#allocation3], 4294961152 }
  0x25   :  { %605 = dma.done.wait [#allocation5], 2048  }
  0x26   :  { %606 = vsyncadd [#allocation5], 4294965248  ;;  %v613_v0 = vmov 0.0|0.0   ;;  %v614_v1 = vmov 0.0   ;;  %vm615_vm0 = vmmov 0   ;;  %v47_v2 = vld [vmem:[#allocation2 + $0x8] sm:$0xff] }
  0x27   :  { %490 = vmatprep.subr.bf16.mxu1 %v613_v0  ;;  %158 = vmatprep.mubr.f32.mxu0 %v614_v1  ;;  %v50_v3 = vld [vmem:[#allocation2 + $0x20] sm:$0xff]  ;;  %v49_v6 = vld [vmem:[#allocation2 + $0x18] sm:$0xff]  ;;  %v56_v8 = vld [vmem:[#allocation2 + $0x50] sm:$0xff] }
  0x28   :  { %420 = vmatprep.mubr.msk.f32.mxu1 %vm615_vm0, %v614_v1  ;;  %v46_v4 = vld [vmem:[#allocation2] sm:$0xff]  ;;  %v458_v5 = vpack.c.bf16 %v50_v3, %v47_v2  ;;  %v53_v7 = vld [vmem:[#allocation2 + $0x38] sm:$0xff]  ;;  %v52_v11 = vld [vmem:[#allocation2 + $0x30] sm:$0xff] }
  0x29   :  { %v460_v9 = vpack.c.bf16 %v49_v6, %v46_v4  ;;  %v462_v10 = vpack.c.bf16 %v56_v8, %v53_v7  ;;  %v55_v12 = vld [vmem:[#allocation2 + $0x48] sm:$0xff]  ;;  %v62_v14 = vld [vmem:[#allocation2 + $0x80] sm:$0xff]  ;;  %v61_v18 = vld [vmem:[#allocation2 + $0x78] sm:$0xff] }
  0x2a   :  { %v59_v13 = vld [vmem:[#allocation2 + $0x68] sm:$0xff]  ;;  %459 = vmatprep.subr.bf16.mxu0 %v458_v5  ;;  %v464_v15 = vpack.c.bf16 %v55_v12, %v52_v11  ;;  %v58_v16 = vld [vmem:[#allocation2 + $0x60] sm:$0xff]  ;;  %v48_v19 = vld [vmem:[#allocation2 + $0x10] sm:$0xff] }
  0x2b   :  { %461 = vmatpush1.bf16.msra.mxu0 %v460_v9  ;;  %v466_v17 = vpack.c.bf16 %v62_v14, %v59_v13  ;;  %v51_v20 = vld [vmem:[#allocation2 + $0x28] sm:$0xff]  ;;  %v65_v21 = vld [vmem:[#allocation2 + $0x98] sm:$0xff]  ;;  %v68_v22 = vld [vmem:[#allocation2 + $0xb0] sm:$0xff]  ;;  %v468_v26 = vpack.c.bf16 %v61_v18, %v58_v16 }
  0x2c   :  { %463 = vmatprep.subr.bf16.mxu0 %v462_v10  ;;  %v491_v23 = vpack.c.bf16 %v51_v20, %v48_v19  ;;  %v54_v24 = vld [vmem:[#allocation2 + $0x40] sm:$0xff]  ;;  %v57_v25 = vld [vmem:[#allocation2 + $0x58] sm:$0xff]  ;;  %v64_v27 = vld [vmem:[#allocation2 + $0x90] sm:$0xff]  ;;  %v470_v29 = vpack.c.bf16 %v68_v22, %v65_v21 }
  0x2d   :  { %v494_v28 = vpack.c.bf16 %v57_v25, %v54_v24  ;;  %v67_v30 = vld [vmem:[#allocation2 + $0xa8] sm:$0xff]  ;;  %v60_v31 = vld [vmem:[#allocation2 + $0x70] sm:$0xff]  ;;  %v74_v34 = vld [vmem:[#allocation2 + $0xe0] sm:$0xff] }
  0x2e   :  { %492 = vmatpush3.bf16.msra.mxu1 %v491_v23  ;;  %v63_v32 = vld [vmem:[#allocation2 + $0x88] sm:$0xff]  ;;  %v472_v35 = vpack.c.bf16 %v67_v30, %v64_v27  ;;  %v70_v36 = vld [vmem:[#allocation2 + $0xc0] sm:$0xff]  ;;  %v73_v39 = vld [vmem:[#allocation2 + $0xd8] sm:$0xff] }
  0x2f   :  { %465 = vmatpush1.bf16.msra.mxu0 %v464_v15  ;;  %493 = vmatprep.subr.bf16.mxu1 %v613_v0  ;;  %v71_v33 = vld [vmem:[#allocation2 + $0xc8] sm:$0xff]  ;;  %v497_v37 = vpack.c.bf16 %v63_v32, %v60_v31  ;;  %v66_v40 = vld [vmem:[#allocation2 + $0xa0] sm:$0xff]  ;;  %v69_v41 = vld [vmem:[#allocation2 + $0xb8] sm:$0xff]  ;;  %v476_v44 = vpack.c.bf16 %v73_v39, %v70_v36 }
  0x30   :  { %467 = vmatprep.subr.bf16.mxu0 %v466_v17  ;;  %v474_v38 = vpack.c.bf16 %v74_v34, %v71_v33  ;;  %v77_v42 = vld [vmem:[#allocation2 + $0xf8] sm:$0xff]  ;;  %v80_v43 = vld [vmem:[#allocation2 + $0x110] sm:$0xff]  ;;  %v500_v46 = vpack.c.bf16 %v69_v41, %v66_v40  ;;  %v79_v48 = vld [vmem:[#allocation2 + $0x108] sm:$0xff] }
  0x31   :  { %v76_v45 = vld [vmem:[#allocation2 + $0xf0] sm:$0xff]  ;;  %v478_v47 = vpack.c.bf16 %v80_v43, %v77_v42  ;;  %v75_v50 = vld [vmem:[#allocation2 + $0xe8] sm:$0xff]  ;;  %v86_v52 = vld [vmem:[#allocation2 + $0x140] sm:$0xff] }
  0x32   :  { %495 = vmatpush3.bf16.msra.mxu1 %v494_v28  ;;  %v72_v49 = vld [vmem:[#allocation2 + $0xd0] sm:$0xff]  ;;  %v83_v51 = vld [vmem:[#allocation2 + $0x128] sm:$0xff]  ;;  %v480_v53 = vpack.c.bf16 %v79_v48, %v76_v45  ;;  %v82_v54 = vld [vmem:[#allocation2 + $0x120] sm:$0xff] }
  0x33   :  { %469 = vmatpush1.bf16.msra.mxu0 %v468_v26  ;;  %496 = vmatprep.subr.bf16.mxu1 %v613_v0  ;;  %v503_v55 = vpack.c.bf16 %v75_v50, %v72_v49  ;;  %v482_v56 = vpack.c.bf16 %v86_v52, %v83_v51  ;;  %v85_v57 = vld [vmem:[#allocation2 + $0x138] sm:$0xff]  ;;  %v78_v58 = vld [vmem:[#allocation2 + $0x100] sm:$0xff]  ;;  %v92_v61 = vld [vmem:[#allocation2 + $0x170] sm:$0xff] }
  0x34   :  { %471 = vmatprep.subr.bf16.mxu0 %v470_v29  ;;  %v81_v59 = vld [vmem:[#allocation2 + $0x118] sm:$0xff]  ;;  %v484_v62 = vpack.c.bf16 %v85_v57, %v82_v54  ;;  %v88_v63 = vld [vmem:[#allocation2 + $0x150] sm:$0xff]  ;;  %v91_v4 = vld [vmem:[#allocation2 + $0x168] sm:$0xff] }
  0x35   :  { %v89_v60 = vld [vmem:[#allocation2 + $0x158] sm:$0xff]  ;;  %v506_v2 = vpack.c.bf16 %v81_v59, %v78_v58  ;;  %v84_v5 = vld [vmem:[#allocation2 + $0x130] sm:$0xff]  ;;  %v87_v6 = vld [vmem:[#allocation2 + $0x148] sm:$0xff]  ;;  %v488_v7 = vpack.c.bf16 %v91_v4, %v88_v63 }
  0x36   :  { %498 = vmatpush3.bf16.msra.mxu1 %v497_v37  ;;  %v486_v3 = vpack.c.bf16 %v92_v61, %v89_v60  ;;  %v509_v8 = vpack.c.bf16 %v87_v6, %v84_v5  ;;  %v90_v9 = vld [vmem:[#allocation2 + $0x160] sm:$0xff]  ;;  %v93_v10 = vld [vmem:[#allocation2 + $0x178] sm:$0xff]  ;;  %v252_v14 = vld [vmem:[#allocation4 + $0x8] sm:$0xff] }
  0x37   :  { %473 = vmatpush1.bf16.msra.mxu0 %v472_v35  ;;  %499 = vmatprep.subr.bf16.mxu1 %v613_v0  ;;  %v45_v11 = vld [vmem:[%s695_s0] sm:$0xff]  ;;  %v512_v12 = vpack.c.bf16 %v93_v10, %v90_v9  ;;  %v253_v16 = vld [vmem:[#allocation4 + $0x10] sm:$0xff]  ;;  %v254_v17 = vld [vmem:[#allocation4 + $0x18] sm:$0xff] }
  0x38   :  { %475 = vmatprep.subr.bf16.mxu0 %v474_v38  ;;  %v251_v13 = vld [vmem:[#allocation4] sm:$0xff]  ;;  %v518_v18 = vpack.c.bf16 %v254_v17, %v253_v16  ;;  %v256_v20 = vld [vmem:[#allocation4 + $0x28] sm:$0xff]  ;;  %v258_v22 = vld [vmem:[#allocation4 + $0x38] sm:$0xff] }
  0x39   :  { %v515_v15 = vpack.c.bf16 %v252_v14, %v251_v13  ;;  %v255_v19 = vld [vmem:[#allocation4 + $0x20] sm:$0xff]  ;;  %v260_v25 = vld [vmem:[#allocation4 + $0x48] sm:$0xff]  ;;  %v261_v27 = vld [vmem:[#allocation4 + $0x50] sm:$0xff] }
  0x3a   :  { %501 = vmatpush3.bf16.msra.mxu1 %v500_v46  ;;  %v521_v21 = vpack.c.bf16 %v256_v20, %v255_v19  ;;  %v259_v24 = vld [vmem:[#allocation4 + $0x40] sm:$0xff]  ;;  %v262_v28 = vld [vmem:[#allocation4 + $0x58] sm:$0xff]  ;;  %v264_v31 = vld [vmem:[#allocation4 + $0x68] sm:$0xff] }
  0x3b   :  { %477 = vmatpush1.bf16.msra.mxu0 %v476_v44  ;;  %502 = vmatprep.subr.bf16.mxu1 %v613_v0  ;;  %v527_v26 = vpack.c.bf16 %v260_v25, %v259_v24  ;;  %v530_v29 = vpack.c.bf16 %v262_v28, %v261_v27  ;;  %v263_v30 = vld [vmem:[#allocation4 + $0x60] sm:$0xff]  ;;  %v265_v33 = vld [vmem:[#allocation4 + $0x70] sm:$0xff]  ;;  %v266_v34 = vld [vmem:[#allocation4 + $0x78] sm:$0xff] }
  0x3c   :  { %479 = vmatprep.subr.bf16.mxu0 %v478_v47  ;;  %v533_v32 = vpack.c.bf16 %v264_v31, %v263_v30  ;;  %v536_v35 = vpack.c.bf16 %v266_v34, %v265_v33  ;;  %v353_v51 = vld [vmem:[%s698_s3] ss:$0 sm:$0xff] }
  0x3e   :  { %504 = vmatpush3.bf16.msra.mxu1 %v503_v55 }
  0x3f   :  { %481 = vmatpush1.bf16.msra.mxu0 %v480_v53  ;;  %505 = vmatprep.subr.bf16.mxu1 %v613_v0 }
  0x40   :  { %483 = vmatprep.subr.bf16.mxu0 %v482_v56 }
  0x42   :  { %507 = vmatpush3.bf16.msra.mxu1 %v506_v2 }
  0x43   :  { %485 = vmatpush1.bf16.msra.mxu0 %v484_v62  ;;  %508 = vmatprep.subr.bf16.mxu1 %v613_v0 }
  0x44   :  { %487 = vmatprep.subr.bf16.mxu0 %v486_v3 }
  0x46   :  { %510 = vmatpush3.bf16.msra.mxu1 %v509_v8 }
  0x47   :  { %489 = vmatpush1.bf16.msra.mxu0 %v488_v7  ;;  %511 = vmatprep.subr.bf16.mxu1 %v613_v0 }
  0x48   :  { %514 = vmatprep.subr.bf16.mxu0 %v613_v0 }
  0x4a   :  { %159 = vmatmul.mubr.f32.vlgmr.msra.gmra.mrb[0].mxu0 %v45_v11  ;;  %513 = vmatpush3.bf16.msra.mxu1 %v512_v12 }
  0x4b   :  { %455 = vmatprep.mubr.msk.f32.mxu0 %vm615_vm0, %v614_v1  ;;  %516 = vmatpush3.bf16.msra.mxu0 %v515_v15  ;;  %v257_v1 = vld [vmem:[#allocation4 + $0x30] sm:$0xff] }
  0x4c   :  { %517 = vmatprep.subr.bf16.mxu0 %v613_v0  ;;  %v524_v23 = vpack.c.bf16 %v258_v22, %v257_v1 }
  0x4d   :  { %421 = vmatmul.mubr.f32.vlgmr.msra.gmra.mrb[0].mxu1 %v45_v11 }
  0x4f   :  { %519 = vmatpush3.bf16.msra.mxu0 %v518_v18 }
  0x50   :  { %520 = vmatprep.subr.bf16.mxu0 %v613_v0 }
  0x53   :  { %522 = vmatpush3.bf16.msra.mxu0 %v521_v21 }
  0x54   :  { %523 = vmatprep.subr.bf16.mxu0 %v613_v0 }
  0x57   :  { %525 = vmatpush3.bf16.msra.mxu0 %v524_v23 }
  0x58   :  { %526 = vmatprep.subr.bf16.mxu0 %v613_v0 }
  0x5b   :  { %528 = vmatpush3.bf16.msra.mxu0 %v527_v26 }
  0x5c   :  { %529 = vmatprep.subr.bf16.mxu0 %v613_v0 }
  0x5f   :  { %531 = vmatpush3.bf16.msra.mxu0 %v530_v29 }
  0x60   :  { %532 = vmatprep.subr.bf16.mxu0 %v613_v0 }
  0x63   :  { %534 = vmatpush3.bf16.msra.mxu0 %v533_v32 }
  0x64   :  { %535 = vmatprep.subr.bf16.mxu0 %v613_v0 }
  0x67   :  { %537 = vmatpush3.bf16.msra.mxu0 %v536_v35 }
 0x11d   :  { %v160_v36 = vpop.f32.mrb[0].mxu0 }
 0x11e   :  { %v351_v37 = vmul.f32 -1.442695, %v160_v36  ;;  %v162_v38 = vpop.f32.mrb[1].mxu0 }
 0x120   :  { %547 = vpow2.f32 %v351_v37  ;;  %v231_v39 = vpop.f32.mrb[0].mxu1 }
 0x121   :  { %v422_v40 = vpop.f32.mrb[1].mxu1  ;;  %v352_v41 = vmul.f32 -1.442695, %v231_v39 }
 0x123   :  { %549 = vpow2.f32 %v352_v41 }
 0x124   :  { %551 = vtanh.f32 %v162_v38 }
 0x12a   :  { %v548_v42 = vpop.eup %547 }
 0x12b   :  { %v238_v43 = vadd.f32 1.0, %v548_v42 }
 0x12d   :  { %553 = vrcp.f32 %v238_v43  ;;  %v550_v44 = vpop.eup %549 }
 0x12e   :  { %v245_v45 = vadd.f32 1.0, %v550_v44  ;;  %v552_v46 = vpop.eup %551 }
 0x130   :  { %555 = vrcp.f32 %v245_v45 }
 0x137   :  { %v554_v47 = vpop.eup %553 }
 0x138   :  { %v248_v48 = vmul.f32 %v554_v47, %v552_v46 }
 0x13a   :  { %557 = vtanh.f32 %v248_v48  ;;  %v556_v0 = vpop.eup %555 }
 0x144   :  { %v558_v49 = vpop.eup %557 }
 0x145   :  { %v250_v50 = vmul.f32 %v558_v49, %v556_v0 }
 0x147   :  { %456 = vmatmul.mubr.f32.vlgmr.msra.gmra.mrb[2].mxu0 %v250_v50 }
 0x21a   :  { %v340_v52 = vpop.f32.mrb[2].mxu0 }
 0x21b   :  { %v341_v53 = vadd.f32 %v353_v51, %v340_v52  ;;  %v457_v54 = vpop.f32.mrb[3].mxu0 }
 0x21d   :  { %344 = vst [vmem:[%s699_s4] sm:$0xff] %v341_v53 }
 0x21e   :  { %349 = vsyncpa [#allocation3], 1 }
 0x21f   :  { %350 = vsyncpa [#allocation5], 1 }

</bundles_post_ra>
